<compile_context>
chip_gen: v7x
topology: tpu7x:2x2x1
jax: 0.10.0
libtpu: 0.0.40
codegen_flags: <defaults>
</compile_context>

<pallas_src>
import functools
import math

import jax
import jax.numpy as jnp
from jax.experimental import pallas as pl
from jax.experimental.pallas import tpu as pltpu


# -----------------------------------------------------------------------------
# Pallas kernel: the entire GCNII-GRU cell forward (fused, two phases)
# -----------------------------------------------------------------------------
def gcnii_gru_cell_kernel(x_ref, a_ref, h_ref,
                          w1x_ref, w1h_ref, b1_ref, wc1_ref, wo1_ref, bo1_ref,
                          w2x_ref, w2h_ref, b2_ref, wc2_ref, wo2_ref, bo2_ref,
                          out_ref, *, num_layers, alpha, lamda, hidden):
    x_bf = x_ref[...]                       # (N, input_dim) bf16
    a_bf = a_ref[...]                       # (N, N)         bf16
    h_prev = h_ref[...]                     # (N, H)         f32
    h_prev_bf = h_prev.astype(jnp.bfloat16)

    def propagate(h0, wc_ref):
        # GCNII propagation over a fused multi-module slab (W = 4H or 2H).
        # Static unroll: num_layers is small and known at trace time.
        h = h0
        for l in range(1, num_layers + 1):
            theta = math.log(lamda / l + 1.0)
            hi = jnp.dot(a_bf, h.astype(jnp.bfloat16),
                         preferred_element_type=jnp.float32)
            support = (1.0 - alpha) * hi + alpha * h0
            hw = jnp.dot(support.astype(jnp.bfloat16), wc_ref[l - 1],
                         preferred_element_type=jnp.float32)
            h = jnp.maximum(theta * hw + (1.0 - theta) * support, 0.0)
        return h

    # ---- phase 1: fused modules [z_x, r_x, z_h, r_h] -> (N, 4H) slab -------
    h0_1 = jnp.maximum(
        jnp.dot(x_bf, w1x_ref[...], preferred_element_type=jnp.float32)
        + jnp.dot(h_prev_bf, w1h_ref[...], preferred_element_type=jnp.float32)
        + b1_ref[...], 0.0)
    h1 = propagate(h0_1, wc1_ref)
    # Packed output projection already sums x-path + h-path per gate:
    # columns [0:H] = Z pre-activation, [H:2H] = R pre-activation.
    zr = (jnp.dot(h1.astype(jnp.bfloat16), wo1_ref[...],
                  preferred_element_type=jnp.float32) + bo1_ref[...])
    z_gate = jnp.maximum(zr[:, :hidden], 0.0)   # reference uses relu, not sigmoid
    r_gate = jnp.maximum(zr[:, hidden:], 0.0)

    # ---- phase 2: fused modules [h_x, h_h] -> (N, 2H) slab ------------------
    rh_bf = (r_gate * h_prev).astype(jnp.bfloat16)
    h0_2 = jnp.maximum(
        jnp.dot(x_bf, w2x_ref[...], preferred_element_type=jnp.float32)
        + jnp.dot(rh_bf, w2h_ref[...], preferred_element_type=jnp.float32)
        + b2_ref[...], 0.0)
    h2 = propagate(h0_2, wc2_ref)
    h_tilde = jnp.tanh(
        jnp.dot(h2.astype(jnp.bfloat16), wo2_ref[...],
                preferred_element_type=jnp.float32) + bo2_ref[...])

    out_ref[...] = z_gate * h_prev + (1.0 - z_gate) * h_tilde


# -----------------------------------------------------------------------------
# Wrapper: weight packing (layout plumbing, hoist out of any time-step scan)
# -----------------------------------------------------------------------------
def _block_diag(*blocks):
    n = len(blocks)
    rows = []
    for i, b in enumerate(blocks):
        row = [b if j == i else jnp.zeros((b.shape[0], blocks[j].shape[1]),
                                          b.dtype) for j in range(n)]
        rows.append(jnp.concatenate(row, axis=1))
    return jnp.concatenate(rows, axis=0)


def _pack_params(params, input_dim, hidden):
    f32, bf16 = jnp.float32, jnp.bfloat16
    w_in_x = params["w_in_x"].astype(f32)   # (3, in, H)   x-path input proj (z,r,h)
    w_in_h = params["w_in_h"].astype(f32)   # (3, H,  H)   h-path input proj (z,r,h)
    b_in = params["b_in"].astype(f32)       # (6, 1, H)    order z_x,z_h,r_x,r_h,h_x,h_h
    w_conv = params["w_conv"].astype(f32)   # (6, L, H, H)
    w_out = params["w_out"].astype(f32)     # (6, H, H)
    b_out = params["b_out"].astype(f32)     # (6, 1, H)
    num_layers = w_conv.shape[1]
    zih = jnp.zeros((input_dim, hidden), f32)
    zhh = jnp.zeros((hidden, hidden), f32)

    # phase-1 slab column order: [z_x, r_x, z_h, r_h]  (module ids 0, 2, 1, 3)
    w1x = jnp.concatenate([w_in_x[0], w_in_x[1], zih, zih], axis=1)        # (in, 4H)
    w1h = jnp.concatenate([zhh, zhh, w_in_h[0], w_in_h[1]], axis=1)        # (H,  4H)
    b1 = jnp.concatenate([b_in[0], b_in[2], b_in[1], b_in[3]], axis=1)     # (1,  4H)
    wc1 = jnp.stack([_block_diag(w_conv[0, l], w_conv[2, l],
                                 w_conv[1, l], w_conv[3, l])
                     for l in range(num_layers)])                          # (L, 4H, 4H)
    # output projection folds x-path + h-path sum: cols [0:H]->Z, [H:2H]->R
    wo1 = jnp.concatenate([
        jnp.concatenate([w_out[0], zhh], axis=1),   # z_x rows
        jnp.concatenate([zhh, w_out[2]], axis=1),   # r_x rows
        jnp.concatenate([w_out[1], zhh], axis=1),   # z_h rows
        jnp.concatenate([zhh, w_out[3]], axis=1),   # r_h rows
    ], axis=0)                                                             # (4H, 2H)
    bo1 = jnp.concatenate([b_out[0] + b_out[1], b_out[2] + b_out[3]],
                          axis=1)                                          # (1, 2H)

    # phase-2 slab column order: [h_x, h_h]  (module ids 4, 5)
    w2x = jnp.concatenate([w_in_x[2], zih], axis=1)                        # (in, 2H)
    w2h = jnp.concatenate([zhh, w_in_h[2]], axis=1)                        # (H,  2H)
    b2 = jnp.concatenate([b_in[4], b_in[5]], axis=1)                       # (1,  2H)
    wc2 = jnp.stack([_block_diag(w_conv[4, l], w_conv[5, l])
                     for l in range(num_layers)])                          # (L, 2H, 2H)
    wo2 = jnp.concatenate([w_out[4], w_out[5]], axis=0)                    # (2H, H)
    bo2 = b_out[4] + b_out[5]                                              # (1, H)

    return (w1x.astype(bf16), w1h.astype(bf16), b1, wc1.astype(bf16),
            wo1.astype(bf16), bo1,
            w2x.astype(bf16), w2h.astype(bf16), b2, wc2.astype(bf16),
            wo2.astype(bf16), bo2)


def gcnii_gru_cell(x, a, h_prev, params, *, num_layers, alpha, lamda):
    n, input_dim = x.shape
    hidden = h_prev.shape[1]
    packed = _pack_params(params, input_dim, hidden)
    kernel = functools.partial(gcnii_gru_cell_kernel, num_layers=num_layers,
                               alpha=alpha, lamda=lamda, hidden=hidden)
    vmem = pl.BlockSpec(memory_space=pltpu.MemorySpace.VMEM)
    return pl.pallas_call(
        kernel,
        out_shape=jax.ShapeDtypeStruct((n, hidden), jnp.float32),
        in_specs=[vmem] * 15,
        out_specs=vmem,
        # Everything (A, activations, packed weights) is held resident in VMEM;
        # fine at these sizes.  For large N the (N,N) adjacency must be tiled
        # over output rows instead (re-derive against 64 MiB on v7x).
        compiler_params=pltpu.CompilerParams(vmem_limit_bytes=64 * 1024 * 1024),
    )(x.astype(jnp.bfloat16), a.astype(jnp.bfloat16), h_prev, *packed)


# -----------------------------------------------------------------------------
# Pure-JAX reference (mirrors the PyTorch semantics) for a correctness check
# -----------------------------------------------------------------------------
def _gcnii_ref(x, adj, w_in, b_in, w_conv, w_out, b_out, alpha, lamda):
    hp = jax.lax.Precision.HIGHEST
    h = jax.nn.relu(jnp.dot(x, w_in, precision=hp) + b_in)
    h0 = h
    for l in range(1, w_conv.shape[0] + 1):
        theta = math.log(lamda / l + 1.0)
        hi = jnp.dot(adj, h, precision=hp)
        support = (1.0 - alpha) * hi + alpha * h0
        h = jax.nn.relu(theta * jnp.dot(support, w_conv[l - 1], precision=hp)
                        + (1.0 - theta) * support)
    return jnp.dot(h, w_out, precision=hp) + b_out


def gcnii_gru_cell_ref(x, a, h_prev, p, *, alpha, lamda):
    def run(inp, g_idx, gi_in_w):
        w_in = p["w_in_x"][gi_in_w] if g_idx % 2 == 0 else p["w_in_h"][gi_in_w]
        return _gcnii_ref(inp, a, w_in, p["b_in"][g_idx], p["w_conv"][g_idx],
                          p["w_out"][g_idx], p["b_out"][g_idx], alpha, lamda)

    Z = jax.nn.relu(run(x, 0, 0) + run(h_prev, 1, 0))
    R = jax.nn.relu(run(x, 2, 1) + run(h_prev, 3, 1))
    H_tilde = jnp.tanh(run(x, 4, 2) + run(R * h_prev, 5, 2))
    return Z * h_prev + (1.0 - Z) * H_tilde


# -----------------------------------------------------------------------------
# Driver
# -----------------------------------------------------------------------------
if __name__ == "__main__":
    N = 16              # number of graph nodes
    INPUT_DIM = 8
    HIDDEN_DIM = 32     # 4*H = 128 -> phase-1 slab is exactly one vreg lane width
    NUM_GCN_LAYERS = 2
    ALPHA = 0.1
    LAMDA = 0.5

    key = jax.random.PRNGKey(0)
    ks = jax.random.split(key, 9)

    x = jax.random.normal(ks[0], (N, INPUT_DIM), jnp.float32)
    # simple symmetric "adjacency"; normalization (if any) happens outside the cell
    a_raw = jax.random.uniform(ks[1], (N, N), jnp.float32)
    a = 0.5 * (a_raw + a_raw.T) / N
    h_prev = jax.random.normal(ks[2], (N, HIDDEN_DIM), jnp.float32)

    params = {
        "w_in_x": 0.1 * jax.random.normal(ks[3], (3, INPUT_DIM, HIDDEN_DIM), jnp.float32),
        "w_in_h": 0.1 * jax.random.normal(ks[4], (3, HIDDEN_DIM, HIDDEN_DIM), jnp.float32),
        "b_in":   0.1 * jax.random.normal(ks[5], (6, 1, HIDDEN_DIM), jnp.float32),
        "w_conv": 0.1 * jax.random.normal(ks[6], (6, NUM_GCN_LAYERS, HIDDEN_DIM, HIDDEN_DIM), jnp.float32),
        "w_out":  0.1 * jax.random.normal(ks[7], (6, HIDDEN_DIM, HIDDEN_DIM), jnp.float32),
        "b_out":  0.1 * jax.random.normal(ks[8], (6, 1, HIDDEN_DIM), jnp.float32),
    }

    out = gcnii_gru_cell(x, a, h_prev, params,
                         num_layers=NUM_GCN_LAYERS, alpha=ALPHA, lamda=LAMDA)
    out = jax.block_until_ready(out)

    ref = gcnii_gru_cell_ref(x, a, h_prev, params, alpha=ALPHA, lamda=LAMDA)
    max_err = float(jnp.max(jnp.abs(out - ref)))
    assert out.shape == (N, HIDDEN_DIM)
    assert jnp.all(jnp.isfinite(out)) and max_err < 5e-2, f"max_err={max_err}"
    print("KERNEL_OK")
</pallas_src>

<mosaic_0001>
module attributes {stable_mosaic.version = 11 : i64} {
  func.func @gcnii_gru_cell_kernel(%arg0: memref<16x8xbf16, #tpu.memory_space<vmem>>, %arg1: memref<16x16xbf16, #tpu.memory_space<vmem>>, %arg2: memref<16x32xf32, #tpu.memory_space<vmem>>, %arg3: memref<8x128xbf16, #tpu.memory_space<vmem>>, %arg4: memref<32x128xbf16, #tpu.memory_space<vmem>>, %arg5: memref<1x128xf32, #tpu.memory_space<vmem>>, %arg6: memref<2x128x128xbf16, #tpu.memory_space<vmem>>, %arg7: memref<128x64xbf16, #tpu.memory_space<vmem>>, %arg8: memref<1x64xf32, #tpu.memory_space<vmem>>, %arg9: memref<8x64xbf16, #tpu.memory_space<vmem>>, %arg10: memref<32x64xbf16, #tpu.memory_space<vmem>>, %arg11: memref<1x64xf32, #tpu.memory_space<vmem>>, %arg12: memref<2x64x64xbf16, #tpu.memory_space<vmem>>, %arg13: memref<64x32xbf16, #tpu.memory_space<vmem>>, %arg14: memref<1x32xf32, #tpu.memory_space<vmem>>, %arg15: memref<16x32xf32, #tpu.memory_space<vmem>>) attributes {dimension_semantics = [], scalar_prefetch = 0 : i64, scratch_operands = 0 : i64, tpu.core_type = #tpu.core_type<tc>} {
    %c0 = arith.constant 0 : index
    %c0_0 = arith.constant 0 : index
    %0 = vector.load %arg0[%c0, %c0_0] : memref<16x8xbf16, #tpu.memory_space<vmem>>, vector<16x8xbf16>
    %c0_1 = arith.constant 0 : index
    %c0_2 = arith.constant 0 : index
    %1 = vector.load %arg1[%c0_1, %c0_2] : memref<16x16xbf16, #tpu.memory_space<vmem>>, vector<16x16xbf16>
    %c0_3 = arith.constant 0 : index
    %c0_4 = arith.constant 0 : index
    %2 = vector.load %arg2[%c0_3, %c0_4] : memref<16x32xf32, #tpu.memory_space<vmem>>, vector<16x32xf32>
    %3 = arith.truncf %2 : vector<16x32xf32> to vector<16x32xbf16>
    %c0_5 = arith.constant 0 : index
    %c0_6 = arith.constant 0 : index
    %4 = vector.load %arg3[%c0_5, %c0_6] : memref<8x128xbf16, #tpu.memory_space<vmem>>, vector<8x128xbf16>
    %cst = arith.constant dense<0.000000e+00> : vector<16x128xf32>
    %5 = tpu.matmul %0, %4, %cst {dimension_numbers = #tpu.dot_dimension_numbers<[1], [0], [0], [1], [0, 0, 1, 1], [], []>} : vector<16x8xbf16>, vector<8x128xbf16>, vector<16x128xf32> -> vector<16x128xf32>
    %c0_7 = arith.constant 0 : index
    %c0_8 = arith.constant 0 : index
    %6 = vector.load %arg4[%c0_7, %c0_8] : memref<32x128xbf16, #tpu.memory_space<vmem>>, vector<32x128xbf16>
    %cst_9 = arith.constant dense<0.000000e+00> : vector<16x128xf32>
    %7 = tpu.matmul %3, %6, %cst_9 {dimension_numbers = #tpu.dot_dimension_numbers<[1], [0], [0], [1], [0, 0, 1, 1], [], []>} : vector<16x32xbf16>, vector<32x128xbf16>, vector<16x128xf32> -> vector<16x128xf32>
    %8 = arith.addf %5, %7 : vector<16x128xf32>
    %c0_10 = arith.constant 0 : index
    %c0_11 = arith.constant 0 : index
    %9 = vector.load %arg5[%c0_10, %c0_11] : memref<1x128xf32, #tpu.memory_space<vmem>>, vector<1x128xf32>
    %10 = vector.broadcast %9 : vector<1x128xf32> to vector<16x128xf32>
    %11 = arith.addf %8, %10 : vector<16x128xf32>
    %cst_12 = arith.constant 0.000000e+00 : f32
    %12 = vector.broadcast %cst_12 : f32 to vector<16x128xf32>
    %13 = arith.maximumf %11, %12 : vector<16x128xf32>
    %14 = arith.truncf %13 : vector<16x128xf32> to vector<16x128xbf16>
    %cst_13 = arith.constant dense<0.000000e+00> : vector<16x128xf32>
    %15 = tpu.matmul %1, %14, %cst_13 {dimension_numbers = #tpu.dot_dimension_numbers<[1], [0], [0], [1], [0, 0, 1, 1], [], []>} : vector<16x16xbf16>, vector<16x128xbf16>, vector<16x128xf32> -> vector<16x128xf32>
    %cst_14 = arith.constant 0.899999976 : f32
    %16 = vector.broadcast %cst_14 : f32 to vector<16x128xf32>
    %17 = arith.mulf %16, %15 : vector<16x128xf32>
    %cst_15 = arith.constant 1.000000e-01 : f32
    %18 = vector.broadcast %cst_15 : f32 to vector<16x128xf32>
    %19 = arith.mulf %18, %13 : vector<16x128xf32>
    %20 = arith.addf %17, %19 : vector<16x128xf32>
    %21 = arith.truncf %20 : vector<16x128xf32> to vector<16x128xbf16>
    %c0_16 = arith.constant 0 : index
    %c0_17 = arith.constant 0 : index
    %c0_18 = arith.constant 0 : index
    %22 = vector.load %arg6[%c0_16, %c0_17, %c0_18] : memref<2x128x128xbf16, #tpu.memory_space<vmem>>, vector<1x128x128xbf16>
    %23 = vector.shape_cast %22 : vector<1x128x128xbf16> to vector<128x128xbf16>
    %cst_19 = arith.constant dense<0.000000e+00> : vector<16x128xf32>
    %24 = tpu.matmul %21, %23, %cst_19 {dimension_numbers = #tpu.dot_dimension_numbers<[1], [0], [0], [1], [0, 0, 1, 1], [], []>} : vector<16x128xbf16>, vector<128x128xbf16>, vector<16x128xf32> -> vector<16x128xf32>
    %cst_20 = arith.constant 0.405465096 : f32
    %25 = vector.broadcast %cst_20 : f32 to vector<16x128xf32>
    %26 = arith.mulf %25, %24 : vector<16x128xf32>
    %cst_21 = arith.constant 0.594534874 : f32
    %27 = vector.broadcast %cst_21 : f32 to vector<16x128xf32>
    %28 = arith.mulf %27, %20 : vector<16x128xf32>
    %29 = arith.addf %26, %28 : vector<16x128xf32>
    %cst_22 = arith.constant 0.000000e+00 : f32
    %30 = vector.broadcast %cst_22 : f32 to vector<16x128xf32>
    %31 = arith.maximumf %29, %30 : vector<16x128xf32>
    %32 = arith.truncf %31 : vector<16x128xf32> to vector<16x128xbf16>
    %cst_23 = arith.constant dense<0.000000e+00> : vector<16x128xf32>
    %33 = tpu.matmul %1, %32, %cst_23 {dimension_numbers = #tpu.dot_dimension_numbers<[1], [0], [0], [1], [0, 0, 1, 1], [], []>} : vector<16x16xbf16>, vector<16x128xbf16>, vector<16x128xf32> -> vector<16x128xf32>
    %cst_24 = arith.constant 0.899999976 : f32
    %34 = vector.broadcast %cst_24 : f32 to vector<16x128xf32>
    %35 = arith.mulf %34, %33 : vector<16x128xf32>
    %cst_25 = arith.constant 1.000000e-01 : f32
    %36 = vector.broadcast %cst_25 : f32 to vector<16x128xf32>
    %37 = arith.mulf %36, %13 : vector<16x128xf32>
    %38 = arith.addf %35, %37 : vector<16x128xf32>
    %39 = arith.truncf %38 : vector<16x128xf32> to vector<16x128xbf16>
    %c1 = arith.constant 1 : index
    %c0_26 = arith.constant 0 : index
    %c0_27 = arith.constant 0 : index
    %40 = vector.load %arg6[%c1, %c0_26, %c0_27] : memref<2x128x128xbf16, #tpu.memory_space<vmem>>, vector<1x128x128xbf16>
    %41 = vector.shape_cast %40 : vector<1x128x128xbf16> to vector<128x128xbf16>
    %cst_28 = arith.constant dense<0.000000e+00> : vector<16x128xf32>
    %42 = tpu.matmul %39, %41, %cst_28 {dimension_numbers = #tpu.dot_dimension_numbers<[1], [0], [0], [1], [0, 0, 1, 1], [], []>} : vector<16x128xbf16>, vector<128x128xbf16>, vector<16x128xf32> -> vector<16x128xf32>
    %cst_29 = arith.constant 0.223143548 : f32
    %43 = vector.broadcast %cst_29 : f32 to vector<16x128xf32>
    %44 = arith.mulf %43, %42 : vector<16x128xf32>
    %cst_30 = arith.constant 0.776856422 : f32
    %45 = vector.broadcast %cst_30 : f32 to vector<16x128xf32>
    %46 = arith.mulf %45, %38 : vector<16x128xf32>
    %47 = arith.addf %44, %46 : vector<16x128xf32>
    %cst_31 = arith.constant 0.000000e+00 : f32
    %48 = vector.broadcast %cst_31 : f32 to vector<16x128xf32>
    %49 = arith.maximumf %47, %48 : vector<16x128xf32>
    %50 = arith.truncf %49 : vector<16x128xf32> to vector<16x128xbf16>
    %c0_32 = arith.constant 0 : index
    %c0_33 = arith.constant 0 : index
    %51 = vector.load %arg7[%c0_32, %c0_33] : memref<128x64xbf16, #tpu.memory_space<vmem>>, vector<128x64xbf16>
    %cst_34 = arith.constant dense<0.000000e+00> : vector<16x64xf32>
    %52 = tpu.matmul %50, %51, %cst_34 {dimension_numbers = #tpu.dot_dimension_numbers<[1], [0], [0], [1], [0, 0, 1, 1], [], []>} : vector<16x128xbf16>, vector<128x64xbf16>, vector<16x64xf32> -> vector<16x64xf32>
    %c0_35 = arith.constant 0 : index
    %c0_36 = arith.constant 0 : index
    %53 = vector.load %arg8[%c0_35, %c0_36] : memref<1x64xf32, #tpu.memory_space<vmem>>, vector<1x64xf32>
    %54 = vector.broadcast %53 : vector<1x64xf32> to vector<16x64xf32>
    %55 = arith.addf %52, %54 : vector<16x64xf32>
    %56 = vector.extract_strided_slice %55 {offsets = [0, 0], sizes = [16, 32], strides = [1, 1]} : vector<16x64xf32> to vector<16x32xf32>
    %cst_37 = arith.constant 0.000000e+00 : f32
    %57 = vector.broadcast %cst_37 : f32 to vector<16x32xf32>
    %58 = arith.maximumf %56, %57 : vector<16x32xf32>
    %59 = vector.extract_strided_slice %55 {offsets = [0, 32], sizes = [16, 32], strides = [1, 1]} : vector<16x64xf32> to vector<16x32xf32>
    %cst_38 = arith.constant 0.000000e+00 : f32
    %60 = vector.broadcast %cst_38 : f32 to vector<16x32xf32>
    %61 = arith.maximumf %59, %60 : vector<16x32xf32>
    %62 = arith.mulf %61, %2 : vector<16x32xf32>
    %63 = arith.truncf %62 : vector<16x32xf32> to vector<16x32xbf16>
    %c0_39 = arith.constant 0 : index
    %c0_40 = arith.constant 0 : index
    %64 = vector.load %arg9[%c0_39, %c0_40] : memref<8x64xbf16, #tpu.memory_space<vmem>>, vector<8x64xbf16>
    %cst_41 = arith.constant dense<0.000000e+00> : vector<16x64xf32>
    %65 = tpu.matmul %0, %64, %cst_41 {dimension_numbers = #tpu.dot_dimension_numbers<[1], [0], [0], [1], [0, 0, 1, 1], [], []>} : vector<16x8xbf16>, vector<8x64xbf16>, vector<16x64xf32> -> vector<16x64xf32>
    %c0_42 = arith.constant 0 : index
    %c0_43 = arith.constant 0 : index
    %66 = vector.load %arg10[%c0_42, %c0_43] : memref<32x64xbf16, #tpu.memory_space<vmem>>, vector<32x64xbf16>
    %cst_44 = arith.constant dense<0.000000e+00> : vector<16x64xf32>
    %67 = tpu.matmul %63, %66, %cst_44 {dimension_numbers = #tpu.dot_dimension_numbers<[1], [0], [0], [1], [0, 0, 1, 1], [], []>} : vector<16x32xbf16>, vector<32x64xbf16>, vector<16x64xf32> -> vector<16x64xf32>
    %68 = arith.addf %65, %67 : vector<16x64xf32>
    %c0_45 = arith.constant 0 : index
    %c0_46 = arith.constant 0 : index
    %69 = vector.load %arg11[%c0_45, %c0_46] : memref<1x64xf32, #tpu.memory_space<vmem>>, vector<1x64xf32>
    %70 = vector.broadcast %69 : vector<1x64xf32> to vector<16x64xf32>
    %71 = arith.addf %68, %70 : vector<16x64xf32>
    %cst_47 = arith.constant 0.000000e+00 : f32
    %72 = vector.broadcast %cst_47 : f32 to vector<16x64xf32>
    %73 = arith.maximumf %71, %72 : vector<16x64xf32>
    %74 = arith.truncf %73 : vector<16x64xf32> to vector<16x64xbf16>
    %cst_48 = arith.constant dense<0.000000e+00> : vector<16x64xf32>
    %75 = tpu.matmul %1, %74, %cst_48 {dimension_numbers = #tpu.dot_dimension_numbers<[1], [0], [0], [1], [0, 0, 1, 1], [], []>} : vector<16x16xbf16>, vector<16x64xbf16>, vector<16x64xf32> -> vector<16x64xf32>
    %cst_49 = arith.constant 0.899999976 : f32
    %76 = vector.broadcast %cst_49 : f32 to vector<16x64xf32>
    %77 = arith.mulf %76, %75 : vector<16x64xf32>
    %cst_50 = arith.constant 1.000000e-01 : f32
    %78 = vector.broadcast %cst_50 : f32 to vector<16x64xf32>
    %79 = arith.mulf %78, %73 : vector<16x64xf32>
    %80 = arith.addf %77, %79 : vector<16x64xf32>
    %81 = arith.truncf %80 : vector<16x64xf32> to vector<16x64xbf16>
    %c0_51 = arith.constant 0 : index
    %c0_52 = arith.constant 0 : index
    %c0_53 = arith.constant 0 : index
    %82 = vector.load %arg12[%c0_51, %c0_52, %c0_53] : memref<2x64x64xbf16, #tpu.memory_space<vmem>>, vector<1x64x64xbf16>
    %83 = vector.shape_cast %82 : vector<1x64x64xbf16> to vector<64x64xbf16>
    %cst_54 = arith.constant dense<0.000000e+00> : vector<16x64xf32>
    %84 = tpu.matmul %81, %83, %cst_54 {dimension_numbers = #tpu.dot_dimension_numbers<[1], [0], [0], [1], [0, 0, 1, 1], [], []>} : vector<16x64xbf16>, vector<64x64xbf16>, vector<16x64xf32> -> vector<16x64xf32>
    %cst_55 = arith.constant 0.405465096 : f32
    %85 = vector.broadcast %cst_55 : f32 to vector<16x64xf32>
    %86 = arith.mulf %85, %84 : vector<16x64xf32>
    %cst_56 = arith.constant 0.594534874 : f32
    %87 = vector.broadcast %cst_56 : f32 to vector<16x64xf32>
    %88 = arith.mulf %87, %80 : vector<16x64xf32>
    %89 = arith.addf %86, %88 : vector<16x64xf32>
    %cst_57 = arith.constant 0.000000e+00 : f32
    %90 = vector.broadcast %cst_57 : f32 to vector<16x64xf32>
    %91 = arith.maximumf %89, %90 : vector<16x64xf32>
    %92 = arith.truncf %91 : vector<16x64xf32> to vector<16x64xbf16>
    %cst_58 = arith.constant dense<0.000000e+00> : vector<16x64xf32>
    %93 = tpu.matmul %1, %92, %cst_58 {dimension_numbers = #tpu.dot_dimension_numbers<[1], [0], [0], [1], [0, 0, 1, 1], [], []>} : vector<16x16xbf16>, vector<16x64xbf16>, vector<16x64xf32> -> vector<16x64xf32>
    %cst_59 = arith.constant 0.899999976 : f32
    %94 = vector.broadcast %cst_59 : f32 to vector<16x64xf32>
    %95 = arith.mulf %94, %93 : vector<16x64xf32>
    %cst_60 = arith.constant 1.000000e-01 : f32
    %96 = vector.broadcast %cst_60 : f32 to vector<16x64xf32>
    %97 = arith.mulf %96, %73 : vector<16x64xf32>
    %98 = arith.addf %95, %97 : vector<16x64xf32>
    %99 = arith.truncf %98 : vector<16x64xf32> to vector<16x64xbf16>
    %c1_61 = arith.constant 1 : index
    %c0_62 = arith.constant 0 : index
    %c0_63 = arith.constant 0 : index
    %100 = vector.load %arg12[%c1_61, %c0_62, %c0_63] : memref<2x64x64xbf16, #tpu.memory_space<vmem>>, vector<1x64x64xbf16>
    %101 = vector.shape_cast %100 : vector<1x64x64xbf16> to vector<64x64xbf16>
    %cst_64 = arith.constant dense<0.000000e+00> : vector<16x64xf32>
    %102 = tpu.matmul %99, %101, %cst_64 {dimension_numbers = #tpu.dot_dimension_numbers<[1], [0], [0], [1], [0, 0, 1, 1], [], []>} : vector<16x64xbf16>, vector<64x64xbf16>, vector<16x64xf32> -> vector<16x64xf32>
    %cst_65 = arith.constant 0.223143548 : f32
    %103 = vector.broadcast %cst_65 : f32 to vector<16x64xf32>
    %104 = arith.mulf %103, %102 : vector<16x64xf32>
    %cst_66 = arith.constant 0.776856422 : f32
    %105 = vector.broadcast %cst_66 : f32 to vector<16x64xf32>
    %106 = arith.mulf %105, %98 : vector<16x64xf32>
    %107 = arith.addf %104, %106 : vector<16x64xf32>
    %cst_67 = arith.constant 0.000000e+00 : f32
    %108 = vector.broadcast %cst_67 : f32 to vector<16x64xf32>
    %109 = arith.maximumf %107, %108 : vector<16x64xf32>
    %110 = arith.truncf %109 : vector<16x64xf32> to vector<16x64xbf16>
    %c0_68 = arith.constant 0 : index
    %c0_69 = arith.constant 0 : index
    %111 = vector.load %arg13[%c0_68, %c0_69] : memref<64x32xbf16, #tpu.memory_space<vmem>>, vector<64x32xbf16>
    %cst_70 = arith.constant dense<0.000000e+00> : vector<16x32xf32>
    %112 = tpu.matmul %110, %111, %cst_70 {dimension_numbers = #tpu.dot_dimension_numbers<[1], [0], [0], [1], [0, 0, 1, 1], [], []>} : vector<16x64xbf16>, vector<64x32xbf16>, vector<16x32xf32> -> vector<16x32xf32>
    %c0_71 = arith.constant 0 : index
    %c0_72 = arith.constant 0 : index
    %113 = vector.load %arg14[%c0_71, %c0_72] : memref<1x32xf32, #tpu.memory_space<vmem>>, vector<1x32xf32>
    %114 = vector.broadcast %113 : vector<1x32xf32> to vector<16x32xf32>
    %115 = arith.addf %112, %114 : vector<16x32xf32>
    %116 = math.tanh %115 : vector<16x32xf32>
    %117 = arith.mulf %58, %2 : vector<16x32xf32>
    %cst_73 = arith.constant 1.000000e+00 : f32
    %118 = vector.broadcast %cst_73 : f32 to vector<16x32xf32>
    %119 = arith.subf %118, %58 : vector<16x32xf32>
    %120 = arith.mulf %119, %116 : vector<16x32xf32>
    %121 = arith.addf %117, %120 : vector<16x32xf32>
    %c0_74 = arith.constant 0 : index
    %c0_75 = arith.constant 0 : index
    %122 = vector.load %arg15[%c0_74, %c0_75] : memref<16x32xf32, #tpu.memory_space<vmem>>, vector<16x32xf32>
    tpu.vector_store %arg15[%c0_74, %c0_75], %121 {strides = array<i32>} : memref<16x32xf32, #tpu.memory_space<vmem>>, vector<16x32xf32>,
    return
  }
}

</mosaic_0001>

<bundles_post_ra>
// kernel: tpu_custom_call.1
= control target key start
LH: loop header
LB: loop body
LE: loop exit
PB: predicated region body
PF: predicated region fallthrough
CT: control target
= control target key end

     0   :  { %20 = vsyncpa [#allocation3], 0  ;;  %s2512_s0 = inlined_call_operand.hbm [shape: bf16[16,8], index: 0, kind: input, shape index: {}]   ;;  %s2513_s1 = inlined_call_operand.hbm [shape: bf16[16,16], index: 1, kind: input, shape index: {}]   ;;  %s2514_s2 = inlined_call_operand.hbm [shape: f32[16,32], index: 2, kind: input, shape index: {}]   ;;  %s2515_s3 = inlined_call_operand.hbm [shape: bf16[8,128], index: 3, kind: input, shape index: {}]   ;;  %s2516_s4 = inlined_call_operand.hbm [shape: bf16[32,128], index: 4, kind: input, shape index: {}]   ;;  %s2517_s5 = inlined_call_operand.hbm [shape: f32[1,128], index: 5, kind: input, shape index: {}]   ;;  %s2518_s6 = inlined_call_operand.hbm [shape: bf16[2,128,128], index: 6, kind: input, shape index: {}]   ;;  %s2519_s7 = inlined_call_operand.hbm [shape: bf16[128,64], index: 7, kind: input, shape index: {}]   ;;  %s2520_s8 = inlined_call_operand.hbm [shape: f32[1,64], index: 8, kind: input, shape index: {}]   ;;  %s2521_s9 = inlined_call_operand.hbm [shape: bf16[8,64], index: 9, kind: input, shape index: {}]   ;;  %s2522_s10 = inlined_call_operand.hbm [shape: bf16[32,64], index: 10, kind: input, shape index: {}]   ;;  %s2523_s11 = inlined_call_operand.hbm [shape: f32[1,64], index: 11, kind: input, shape index: {}]   ;;  %s2524_s12 = inlined_call_operand.hbm [shape: bf16[2,64,64], index: 12, kind: input, shape index: {}]   ;;  %s2525_s13 = inlined_call_operand.hbm [shape: bf16[64,32], index: 13, kind: input, shape index: {}]   ;;  %s2526_s14 = inlined_call_operand.hbm [shape: f32[1,32], index: 14, kind: input, shape index: {}]   ;;  %s2527_s15 = inlined_call_operand.hbm [shape: f32[16,32], index: 15, kind: output, shape index: {}]  }
   0x1   :  { %21 = vsyncpa [#allocation6], 0 }
   0x2   :  { %22 = vsyncpa [#allocation9], 0 }
   0x3   :  { %23 = vsyncpa [#allocation12], 0 }
   0x4   :  { %24 = vsyncpa [#allocation15], 0 }
   0x5   :  { %25 = vsyncpa [#allocation18], 0 }
   0x6   :  { %26 = vsyncpa [#allocation21], 0 }
   0x7   :  { %27 = vsyncpa [#allocation24], 0 }
   0x8   :  { %28 = vsyncpa [#allocation4], 0  ;;  %s2045_s18 = smov [#allocation5]   ;;  %s2046_s20 = smov [#allocation8]  }
   0x9   :  { %s46_s19 = sshll.u32 %s2045_s18, 4  ;;  %s71_s21 = sshll.u32 %s2046_s20, 4  ;;  %s47_s19 = int_to_ptr.vmem [resolvable:$true] %s46_s19  ;;  %s72_s21 = int_to_ptr.vmem [resolvable:$true] %s71_s21 }
   0xa   :  { %s1675_s24 = scalar_lea.hbm %s2513_s1, 128 }
   0xb   :  { %p1676_p0 = scmp.ne.s32.totalorder %s2513_s1, %s1675_s24  ;;  %p1679_p1 = scmp.lt.u32.totalorder %s1675_s24, %s2513_s1 }
   0xd   :  { %p1681_p2 = pnand %p1679_p1, %p1676_p0 }
   0xf   :  { %1684 = shalt.err (!%p1681_p2)
}
  0x10   :  { %s1685_s29 = scalar_lea.vmem %s47_s19, 128  ;;  %p1690_p4 = scmp.lt.s32.totalorder %s47_s19, %s47_s19 }
  0x11   :  { %p1686_p3 = scmp.ne.s32.totalorder %s47_s19, %s1685_s29  ;;  %p1691_p5 = scmp.lt.s32.totalorder %s1685_s29, %s1685_s29 }
  0x13   :  { %p1692_p6 = por %p1691_p5, %p1690_p4 }
  0x15   :  { %p1693_p7 = pnand %p1692_p6, %p1686_p3 }
  0x17   :  { %1696 = shalt.err (!%p1693_p7)
}
  0x18   :  { %s2047_s30 = smov 64   ;;  %s2048_s16 = smov 4  }
  0x19   :  { %52 = dma.hbm_to_vmem [thread:$0]  %s2513_s1, 128, %s47_s19, [#allocation6], %s2047_s30, %s2047_s30, %s2048_s16  }
  0x1a   :  { %s1697_s23 = scalar_lea.hbm %s2515_s3, 64 }
  0x1b   :  { %p1698_p8 = scmp.ne.s32.totalorder %s2515_s3, %s1697_s23  ;;  %p1701_p9 = scmp.lt.u32.totalorder %s1697_s23, %s2515_s3 }
  0x1d   :  { %p1703_p10 = pnand %p1701_p9, %p1698_p8 }
  0x1f   :  { %1706 = shalt.err (!%p1703_p10)
}
  0x20   :  { %s1707_s28 = scalar_lea.vmem %s72_s21, 64  ;;  %p1712_p12 = scmp.lt.s32.totalorder %s72_s21, %s72_s21 }
  0x21   :  { %p1708_p11 = scmp.ne.s32.totalorder %s72_s21, %s1707_s28  ;;  %p1713_p13 = scmp.lt.s32.totalorder %s1707_s28, %s1707_s28 }
  0x23   :  { %p1714_p0 = por %p1713_p13, %p1712_p12 }
  0x25   :  { %p1715_p1 = pnand %p1714_p0, %p1708_p11 }
  0x27   :  { %1718 = shalt.err (!%p1715_p1)
}
  0x28   :  { %74 = dma.hbm_to_vmem [thread:$0]  %s2515_s3, 64, %s72_s21, [#allocation9]  }
  0x29   :  { %s2049_s29 = smov [#allocation11]   ;;  %s2050_s18 = smov [#allocation14]  }
  0x2a   :  { %s93_s17 = sshll.u32 %s2049_s29, 4  ;;  %s114_s20 = sshll.u32 %s2050_s18, 4  ;;  %s94_s17 = int_to_ptr.vmem [resolvable:$true] %s93_s17  ;;  %s2176_s20 = int_to_ptr.vmem [resolvable:$true] %s114_s20 }
  0x2b   :  { %s1719_s24 = scalar_lea.hbm %s2517_s5, 16 }
  0x2c   :  { %p1720_p2 = scmp.ne.s32.totalorder %s2517_s5, %s1719_s24  ;;  %p1723_p3 = scmp.lt.u32.totalorder %s1719_s24, %s2517_s5 }
  0x2e   :  { %p1725_p4 = pnand %p1723_p3, %p1720_p2 }
  0x30   :  { %1728 = shalt.err (!%p1725_p4)
}
  0x31   :  { %s1729_s3 = scalar_lea.vmem %s94_s17, 16  ;;  %s1733_s21 = scalar_lea.vmem %s94_s17, 32 }
  0x32   :  { %p1730_p5 = scmp.ne.s32.totalorder %s94_s17, %s1729_s3  ;;  %p1734_p6 = scmp.lt.s32.totalorder %s94_s17, %s94_s17 }
  0x33   :  { %p1735_p7 = scmp.lt.s32.totalorder %s1733_s21, %s1729_s3 }
  0x35   :  { %p1736_p8 = por %p1735_p7, %p1734_p6 }
  0x37   :  { %p1737_p9 = pnand %p1736_p8, %p1730_p5 }
  0x39   :  { %1740 = shalt.err (!%p1737_p9)
}
  0x3a   :  { %96 = dma.hbm_to_vmem [thread:$0]  %s2517_s5, 16, %s94_s17, [#allocation12]  }
  0x3b   :  { %s1741_s22 = scalar_lea.hbm %s2519_s7, 1024 }
  0x3c   :  { %p1742_p10 = scmp.ne.s32.totalorder %s2519_s7, %s1741_s22  ;;  %p1745_p11 = scmp.lt.u32.totalorder %s1741_s22, %s2519_s7 }
  0x3e   :  { %p1747_p12 = pnand %p1745_p11, %p1742_p10 }
  0x40   :  { %1750 = shalt.err (!%p1747_p12)
}
  0x41   :  { %s1751_s27 = scalar_lea.vmem %s2176_s20, 1024  ;;  %p1756_p0 = scmp.lt.s32.totalorder %s2176_s20, %s2176_s20 }
  0x42   :  { %p1752_p13 = scmp.ne.s32.totalorder %s2176_s20, %s1751_s27  ;;  %p1757_p1 = scmp.lt.s32.totalorder %s1751_s27, %s1751_s27 }
  0x44   :  { %p1758_p2 = por %p1757_p1, %p1756_p0 }
  0x46   :  { %p1759_p3 = pnand %p1758_p2, %p1752_p13 }
  0x48   :  { %1762 = shalt.err (!%p1759_p3)
}
  0x49   :  { %120 = dma.hbm_to_vmem [thread:$0]  %s2519_s7, 1024, %s2176_s20, [#allocation15], %s2047_s30, %s2047_s30, %s2048_s16  }
  0x4a   :  { %s2051_s28 = smov [#allocation17]   ;;  %s2052_s21 = smov [#allocation20]  }
  0x4b   :  { %s137_s3 = sshll.u32 %s2051_s28, 4  ;;  %s159_s1 = sshll.u32 %s2052_s21, 4  ;;  %s138_s3 = int_to_ptr.vmem [resolvable:$true] %s137_s3  ;;  %s160_s1 = int_to_ptr.vmem [resolvable:$true] %s159_s1 }
  0x4c   :  { %s1763_s18 = scalar_lea.hbm %s2521_s9, 64 }
  0x4d   :  { %p1764_p4 = scmp.ne.s32.totalorder %s2521_s9, %s1763_s18  ;;  %p1767_p5 = scmp.lt.u32.totalorder %s1763_s18, %s2521_s9 }
  0x4f   :  { %p1769_p6 = pnand %p1767_p5, %p1764_p4 }
  0x51   :  { %1772 = shalt.err (!%p1769_p6)
}
  0x52   :  { %s1773_s7 = scalar_lea.vmem %s138_s3, 64  ;;  %p1778_p8 = scmp.lt.s32.totalorder %s138_s3, %s138_s3 }
  0x53   :  { %p1774_p7 = scmp.ne.s32.totalorder %s138_s3, %s1773_s7  ;;  %p1779_p9 = scmp.lt.s32.totalorder %s1773_s7, %s1773_s7 }
  0x55   :  { %p1780_p10 = por %p1779_p9, %p1778_p8 }
  0x57   :  { %p1781_p11 = pnand %p1780_p10, %p1774_p7 }
  0x59   :  { %1784 = shalt.err (!%p1781_p11)
}
  0x5a   :  { %140 = dma.hbm_to_vmem [thread:$0]  %s2521_s9, 64, %s138_s3, [#allocation18]  }
  0x5b   :  { %s1785_s17 = scalar_lea.hbm %s2523_s11, 16 }
  0x5c   :  { %p1786_p12 = scmp.ne.s32.totalorder %s2523_s11, %s1785_s17  ;;  %p1789_p13 = scmp.lt.u32.totalorder %s1785_s17, %s2523_s11 }
  0x5e   :  { %p1791_p0 = pnand %p1789_p13, %p1786_p12 }
  0x60   :  { %1794 = shalt.err (!%p1791_p0)
}
  0x61   :  { %s1795_s18 = scalar_lea.vmem %s160_s1, 16  ;;  %s1799_s22 = scalar_lea.vmem %s160_s1, 32 }
  0x62   :  { %p1796_p1 = scmp.ne.s32.totalorder %s160_s1, %s1795_s18  ;;  %p1800_p2 = scmp.lt.s32.totalorder %s160_s1, %s160_s1 }
  0x63   :  { %p1801_p3 = scmp.lt.s32.totalorder %s1799_s22, %s1795_s18 }
  0x65   :  { %p1802_p4 = por %p1801_p3, %p1800_p2 }
  0x67   :  { %p1803_p5 = pnand %p1802_p4, %p1796_p1 }
  0x69   :  { %1806 = shalt.err (!%p1803_p5)
}
  0x6a   :  { %162 = dma.hbm_to_vmem [thread:$0]  %s2523_s11, 16, %s160_s1, [#allocation21]  }
  0x6b   :  { %s2053_s23 = smov [#allocation23]   ;;  %s2054_s25 = smov [#allocation2]  }
  0x6c   :  { %s180_s24 = sshll.u32 %s2053_s23, 4  ;;  %s34_s7 = sshll.u32 %s2054_s25, 4  ;;  %s181_s24 = int_to_ptr.vmem [resolvable:$true] %s180_s24  ;;  %s2234_s7 = int_to_ptr.vmem [resolvable:$true] %s34_s7 }
  0x6d   :  { %s1807_s27 = scalar_lea.hbm %s2525_s13, 512 }
  0x6e   :  { %p1808_p6 = scmp.ne.s32.totalorder %s2525_s13, %s1807_s27  ;;  %p1811_p7 = scmp.lt.u32.totalorder %s1807_s27, %s2525_s13 }
  0x70   :  { %p1813_p8 = pnand %p1811_p7, %p1808_p6 }
  0x72   :  { %1816 = shalt.err (!%p1813_p8)
}
  0x73   :  { %s1817_s11 = scalar_lea.vmem %s181_s24, 512  ;;  %p1822_p10 = scmp.lt.s32.totalorder %s181_s24, %s181_s24 }
  0x74   :  { %p1818_p9 = scmp.ne.s32.totalorder %s181_s24, %s1817_s11  ;;  %p1823_p11 = scmp.lt.s32.totalorder %s1817_s11, %s1817_s11 }
  0x76   :  { %p1824_p12 = por %p1823_p11, %p1822_p10 }
  0x78   :  { %p1825_p13 = pnand %p1824_p12, %p1818_p9 }
  0x7a   :  { %1828 = shalt.err (!%p1825_p13)
}
  0x7b   :  { %186 = dma.hbm_to_vmem [thread:$0]  %s2525_s13, 512, %s181_s24, [#allocation24], %s2047_s30, %s2047_s30, %s2048_s16  }
  0x7c   :  { %s1829_s22 = scalar_lea.hbm %s2512_s0, 128 }
  0x7d   :  { %p1830_p0 = scmp.ne.s32.totalorder %s2512_s0, %s1829_s22  ;;  %p1833_p1 = scmp.lt.u32.totalorder %s1829_s22, %s2512_s0 }
  0x7f   :  { %p1835_p2 = pnand %p1833_p1, %p1830_p0 }
  0x81   :  { %1838 = shalt.err (!%p1835_p2)
}
  0x82   :  { %s1839_s20 = scalar_lea.vmem %s2234_s7, 128  ;;  %p1844_p4 = scmp.lt.s32.totalorder %s2234_s7, %s2234_s7 }
  0x83   :  { %p1840_p3 = scmp.ne.s32.totalorder %s2234_s7, %s1839_s20  ;;  %p1845_p5 = scmp.lt.s32.totalorder %s1839_s20, %s1839_s20 }
  0x85   :  { %p1846_p6 = por %p1845_p5, %p1844_p4 }
  0x87   :  { %p1847_p7 = pnand %p1846_p6, %p1840_p3 }
  0x89   :  { %1850 = shalt.err (!%p1847_p7)
}
  0x8a   :  { %40 = dma.hbm_to_vmem [thread:$0]  %s2512_s0, 128, %s2234_s7, [#allocation3], %s2047_s30, %s2047_s30, %s2048_s16  }
  0x8b   :  { %s2055_s26 = smov [#allocation7]   ;;  %s1851_s28 = scalar_lea.hbm %s2514_s2, 256 }
  0x8c   :  { %s58_s27 = sshll.u32 %s2055_s26, 4  ;;  %p1852_p8 = scmp.ne.s32.totalorder %s2514_s2, %s1851_s28  ;;  %s59_s27 = int_to_ptr.vmem [resolvable:$true] %s58_s27 }
  0x8d   :  { %p1855_p9 = scmp.lt.u32.totalorder %s1851_s28, %s2514_s2 }
  0x8f   :  { %p1857_p10 = pnand %p1855_p9, %p1852_p8 }
  0x91   :  { %1860 = shalt.err (!%p1857_p10)
}
  0x92   :  { %s1861_s29 = scalar_lea.vmem %s59_s27, 256  ;;  %p1866_p12 = scmp.lt.s32.totalorder %s59_s27, %s59_s27 }
  0x93   :  { %p1862_p11 = scmp.ne.s32.totalorder %s59_s27, %s1861_s29  ;;  %p1867_p13 = scmp.lt.s32.totalorder %s1861_s29, %s1861_s29 }
  0x95   :  { %p1868_p0 = por %p1867_p13, %p1866_p12 }
  0x97   :  { %p1869_p1 = pnand %p1868_p0, %p1862_p11 }
  0x99   :  { %1872 = shalt.err (!%p1869_p1)
}
  0x9a   :  { %s2056_s0 = smov 128   ;;  %s2057_s7 = smov 8  }
  0x9b   :  { %64 = dma.hbm_to_vmem [thread:$0]  %s2514_s2, 256, %s59_s27, [#allocation6], %s2056_s0, %s2056_s0, %s2057_s7  }
  0x9c   :  { %s2058_s9 = smov [#allocation10]   ;;  %s2059_s23 = smov [#allocation13]  }
  0x9d   :  { %s80_s3 = sshll.u32 %s2058_s9, 4  ;;  %s102_s25 = sshll.u32 %s2059_s23, 4  ;;  %s81_s3 = int_to_ptr.vmem [resolvable:$true] %s80_s3  ;;  %s103_s25 = int_to_ptr.vmem [resolvable:$true] %s102_s25 }
  0x9e   :  { %s1873_s24 = scalar_lea.hbm %s2516_s4, 256 }
  0x9f   :  { %p1874_p2 = scmp.ne.s32.totalorder %s2516_s4, %s1873_s24  ;;  %p1877_p3 = scmp.lt.u32.totalorder %s1873_s24, %s2516_s4 }
  0xa1   :  { %p1879_p4 = pnand %p1877_p3, %p1874_p2 }
  0xa3   :  { %1882 = shalt.err (!%p1879_p4)
}
  0xa4   :  { %s1883_s2 = scalar_lea.vmem %s81_s3, 256  ;;  %p1888_p6 = scmp.lt.s32.totalorder %s81_s3, %s81_s3 }
  0xa5   :  { %p1884_p5 = scmp.ne.s32.totalorder %s81_s3, %s1883_s2  ;;  %p1889_p7 = scmp.lt.s32.totalorder %s1883_s2, %s1883_s2 }
  0xa7   :  { %p1890_p8 = por %p1889_p7, %p1888_p6 }
  0xa9   :  { %p1891_p9 = pnand %p1890_p8, %p1884_p5 }
  0xab   :  { %1894 = shalt.err (!%p1891_p9)
}
  0xac   :  { %86 = dma.hbm_to_vmem [thread:$0]  %s2516_s4, 256, %s81_s3, [#allocation9], %s2047_s30, %s2047_s30, %s2048_s16  }
  0xad   :  { %s1895_s19 = scalar_lea.hbm %s2518_s6, 2048 }
  0xae   :  { %p1896_p10 = scmp.ne.s32.totalorder %s2518_s6, %s1895_s19  ;;  %p1899_p11 = scmp.lt.u32.totalorder %s1895_s19, %s2518_s6 }
  0xb0   :  { %p1901_p12 = pnand %p1899_p11, %p1896_p10 }
  0xb2   :  { %1904 = shalt.err (!%p1901_p12)
}
  0xb3   :  { %s1905_s23 = scalar_lea.vmem %s103_s25, 2048  ;;  %p1910_p0 = scmp.lt.s32.totalorder %s103_s25, %s103_s25 }
  0xb4   :  { %p1906_p13 = scmp.ne.s32.totalorder %s103_s25, %s1905_s23  ;;  %p1911_p1 = scmp.lt.s32.totalorder %s1905_s23, %s1905_s23 }
  0xb6   :  { %p1912_p2 = por %p1911_p1, %p1910_p0 }
  0xb8   :  { %p1913_p3 = pnand %p1912_p2, %p1906_p13 }
  0xba   :  { %1916 = shalt.err (!%p1913_p3)
}
  0xbb   :  { %108 = dma.hbm_to_vmem [thread:$0]  %s2518_s6, 2048, %s103_s25, [#allocation12], %s2047_s30, %s2047_s30, %s2048_s16  }
  0xbc   :  { %s2060_s20 = smov [#allocation16]   ;;  %s2061_s24 = smov [#allocation19]  }
  0xbd   :  { %s127_s13 = sshll.u32 %s2060_s20, 4  ;;  %s146_s26 = sshll.u32 %s2061_s24, 4  ;;  %s128_s13 = int_to_ptr.vmem [resolvable:$true] %s127_s13  ;;  %s147_s26 = int_to_ptr.vmem [resolvable:$true] %s146_s26 }
  0xbe   :  { %s1917_s28 = scalar_lea.hbm %s2520_s8, 16 }
  0xbf   :  { %p1918_p4 = scmp.ne.s32.totalorder %s2520_s8, %s1917_s28  ;;  %p1921_p5 = scmp.lt.u32.totalorder %s1917_s28, %s2520_s8 }
  0xc1   :  { %p1923_p6 = pnand %p1921_p5, %p1918_p4 }
  0xc3   :  { %1926 = shalt.err (!%p1923_p6)
}
  0xc4   :  { %s1927_s6 = scalar_lea.vmem %s128_s13, 16  ;;  %s1931_s25 = scalar_lea.vmem %s128_s13, 32 }
  0xc5   :  { %p1928_p7 = scmp.ne.s32.totalorder %s128_s13, %s1927_s6  ;;  %p1932_p8 = scmp.lt.s32.totalorder %s128_s13, %s128_s13 }
  0xc6   :  { %p1933_p9 = scmp.lt.s32.totalorder %s1931_s25, %s1927_s6 }
  0xc8   :  { %p1934_p10 = por %p1933_p9, %p1932_p8 }
  0xca   :  { %p1935_p11 = pnand %p1934_p10, %p1928_p7 }
  0xcc   :  { %1938 = shalt.err (!%p1935_p11)
}
  0xcd   :  { %130 = dma.hbm_to_vmem [thread:$0]  %s2520_s8, 16, %s128_s13, [#allocation15]  }
  0xce   :  { %s1939_s22 = scalar_lea.hbm %s2522_s10, 256 }
  0xcf   :  { %p1940_p12 = scmp.ne.s32.totalorder %s2522_s10, %s1939_s22  ;;  %p1943_p13 = scmp.lt.u32.totalorder %s1939_s22, %s2522_s10 }
  0xd1   :  { %p1945_p0 = pnand %p1943_p13, %p1940_p12 }
  0xd3   :  { %1948 = shalt.err (!%p1945_p0)
}
  0xd4   :  { %s1949_s20 = scalar_lea.vmem %s147_s26, 256  ;;  %p1954_p2 = scmp.lt.s32.totalorder %s147_s26, %s147_s26 }
  0xd5   :  { %p1950_p1 = scmp.ne.s32.totalorder %s147_s26, %s1949_s20  ;;  %p1955_p3 = scmp.lt.s32.totalorder %s1949_s20, %s1949_s20 }
  0xd7   :  { %p1956_p4 = por %p1955_p3, %p1954_p2 }
  0xd9   :  { %p1957_p5 = pnand %p1956_p4, %p1950_p1 }
  0xdb   :  { %1960 = shalt.err (!%p1957_p5)
}
  0xdc   :  { %152 = dma.hbm_to_vmem [thread:$0]  %s2522_s10, 256, %s147_s26, [#allocation18], %s2047_s30, %s2047_s30, %s2048_s16  }
  0xdd   :  { %s2062_s24 = smov [#allocation22]   ;;  %s2063_s17 = smov [#allocation25]  }
  0xde   :  { %s168_s5 = sshll.u32 %s2062_s24, 4  ;;  %s193_s28 = sshll.u32 %s2063_s17, 4  ;;  %s169_s5 = int_to_ptr.vmem [resolvable:$true] %s168_s5  ;;  %s194_s28 = int_to_ptr.vmem [resolvable:$true] %s193_s28 }
  0xdf   :  { %s1961_s21 = scalar_lea.hbm %s2524_s12, 1024 }
  0xe0   :  { %p1962_p6 = scmp.ne.s32.totalorder %s2524_s12, %s1961_s21  ;;  %p1965_p7 = scmp.lt.u32.totalorder %s1961_s21, %s2524_s12 }
  0xe2   :  { %p1967_p8 = pnand %p1965_p7, %p1962_p6 }
  0xe4   :  { %1970 = shalt.err (!%p1967_p8)
}
  0xe5   :  { %s1971_s10 = scalar_lea.vmem %s169_s5, 1024  ;;  %p1976_p10 = scmp.lt.s32.totalorder %s169_s5, %s169_s5 }
  0xe6   :  { %p1972_p9 = scmp.ne.s32.totalorder %s169_s5, %s1971_s10  ;;  %p1977_p11 = scmp.lt.s32.totalorder %s1971_s10, %s1971_s10 }
  0xe8   :  { %p1978_p12 = por %p1977_p11, %p1976_p10 }
  0xea   :  { %p1979_p13 = pnand %p1978_p12, %p1972_p9 }
  0xec   :  { %1982 = shalt.err (!%p1979_p13)
}
  0xed   :  { %174 = dma.hbm_to_vmem [thread:$0]  %s2524_s12, 1024, %s169_s5, [#allocation21], %s2047_s30, %s2047_s30, %s2048_s16  }
  0xee   :  { %s1983_s22 = scalar_lea.hbm %s2526_s14, 16 }
  0xef   :  { %p1984_p0 = scmp.ne.s32.totalorder %s2526_s14, %s1983_s22  ;;  %p1987_p1 = scmp.lt.u32.totalorder %s1983_s22, %s2526_s14 }
  0xf1   :  { %p1989_p2 = pnand %p1987_p1, %p1984_p0 }
  0xf3   :  { %1992 = shalt.err (!%p1989_p2)
}
  0xf4   :  { %s1993_s20 = scalar_lea.vmem %s194_s28, 16  ;;  %s1997_s8 = scalar_lea.vmem %s194_s28, 32 }
  0xf5   :  { %p1994_p3 = scmp.ne.s32.totalorder %s194_s28, %s1993_s20  ;;  %p1998_p4 = scmp.lt.s32.totalorder %s194_s28, %s194_s28 }
  0xf6   :  { %p1999_p5 = scmp.lt.s32.totalorder %s1997_s8, %s1993_s20 }
  0xf8   :  { %p2000_p6 = por %p1999_p5, %p1998_p4 }
  0xfa   :  { %p2001_p7 = pnand %p2000_p6, %p1994_p3 }
  0xfc   :  { %2004 = shalt.err (!%p2001_p7)
}
  0xfd   :  { %196 = dma.hbm_to_vmem [thread:$0]  %s2526_s14, 16, %s194_s28, [#allocation24]  }
  0xfe   :  { %2027 = dma.done.wait [#allocation3], 128  }
  0xff   :  { %2028 = vsyncadd [#allocation3], 4294967168 }
 0x100   :  { %2029 = dma.done.wait [#allocation6], 384  }
 0x101   :  { %2030 = vsyncadd [#allocation6], 4294966912 }
 0x102   :  { %2031 = dma.done.wait [#allocation9], 320  }
 0x103   :  { %2032 = vsyncadd [#allocation9], 4294966976 }
 0x104   :  { %2033 = dma.done.wait [#allocation12], 2064  }
 0x105   :  { %2034 = vsyncadd [#allocation12], 4294965232 }
 0x106   :  { %2035 = dma.done.wait [#allocation15], 1040  }
 0x107   :  { %2036 = vsyncadd [#allocation15], 4294966256 }
 0x108   :  { %2037 = dma.done.wait [#allocation18], 320  }
 0x109   :  { %2038 = vsyncadd [#allocation18], 4294966976 }
 0x10a   :  { %2039 = dma.done.wait [#allocation21], 1040  }
 0x10b   :  { %2040 = vsyncadd [#allocation21], 4294966256 }
 0x10c   :  { %2041 = dma.done.wait [#allocation24], 528  }
 0x10d   :  { %2042 = vsyncadd [#allocation24], 4294966768  ;;  %v2064_v0 = vmov 0.0   ;;  %vm2065_vm0 = vmmov 0   ;;  %vm321_vm1 = vcmask 1043456   ;;  %v1629_v1 = vld [vmem:[#allocation10] sm:$0xff]  }
 0x10e   :  { %1457 = vmatprep.subr.bf16.mxu0 %v2064_v0  ;;  %1465 = vmatprep.subr.bf16.mxu1 %v2064_v0  ;;  %v250_v2 = vld [vmem:[#allocation8] sm:$0xf]  ;;  %v1630_v4 = vld [vmem:[#allocation10 + $0x8] sm:$0xff]   ;;  %vm317_vm2 = vcmask 64512   ;;  %v2382_v7 = vld [vmem:[#allocation7 + $0x8] sm:$0xff]  ;;  %vm267_vm3 = vcmask 261120  }
 0x10f   :  { %1467 = vmatprep.mubr.msk.bf16.mxu1 %vm2065_vm0, %v2064_v0  ;;  %1461 = vmatprep.mubr.msk.bf16.mxu0 %vm2065_vm0, %v2064_v0  ;;  %v323_v3 = vsel %vm321_vm1, %v250_v2, 0  ;;  %v2377_v5 = vld [vmem:[#allocation2] sm:$0xff]   ;;  %v2380_v6 = vld [vmem:[#allocation7] sm:$0xff]  ;;  %v2401_v31 = vld [vmem:[#allocation5] sm:$0xff]   ;;  %vm383_vm4 = vcmask 130048   ;;  %s2066_s14 = smov 32  }
 0x110   :  { %1458 = vmatpush3.bf16.msra.mxu0 %v1629_v1  ;;  %1466 = vmatpush3.bf16.msra.mxu1 %v323_v3  ;;  %v249_v8 = vpack.c.bf16 %v2382_v7, %v2380_v6  ;;  %v1633_v9 = vld [vmem:[#allocation13] sm:$0xff]   ;;  %v1634_v10 = vld [vmem:[#allocation13 + $0x8] sm:$0xff]   ;;  %v1635_v11 = vld [vmem:[#allocation13 + $0x10] sm:$0xff]   ;;  %s2067_s16 = smov 96   ;;  %vm1035_vm5 = vcmask 523264   ;;  %s2068_s13 = smov [#allocation26]  }
 0x111   :  { %1459 = vmatprep.subr.bf16.mxu0 %v2064_v0  ;;  %1471 = vmatprep.subr.bf16.mxu1 %v2064_v0  ;;  %v1636_v12 = vld [vmem:[#allocation13 + $0x18] sm:$0xff]   ;;  %v1637_v13 = vld [vmem:[#allocation13 + $0x20] sm:$0xff]   ;;  %v1638_v14 = vld [vmem:[#allocation13 + $0x28] sm:$0xff]   ;;  %s1321_s24 = sshll.u32 %s2068_s13, 4  ;;  %s1322_s24 = int_to_ptr.vmem [resolvable:$true] %s1321_s24 }
 0x112   :  { %v1345_v19 = vld [vmem:[#allocation11] ss:$0 sm:$0xff]  ;;  %v1639_v32 = vld [vmem:[#allocation13 + $0x30] sm:$0xff]   ;;  %v1641_v58 = vld [vmem:[#allocation13 + $0x40] sm:$0xff]   ;;  %826 = vrot.lane.b32.xlu0 %v2380_v6, %s2066_s14  ;;  %s2005_s5 = scalar_lea.vmem %s1322_s24, 256  ;;  %p2010_p9 = scmp.lt.s32.totalorder %s1322_s24, %s1322_s24 }
 0x113   :  { %1468 = vmatmul.mubr.msk.bf16.vlgmr.msra.gmra.mrb[0].mxu1 %vm317_vm2, %v2377_v5  ;;  %v1640_v33 = vld [vmem:[#allocation13 + $0x38] sm:$0xff]   ;;  %v1642_v59 = vld [vmem:[#allocation13 + $0x48] sm:$0xff]   ;;  %v1643_v60 = vld [vmem:[#allocation13 + $0x50] sm:$0xff]   ;;  %p2006_p8 = scmp.ne.s32.totalorder %s1322_s24, %s2005_s5  ;;  %p2011_p10 = scmp.lt.s32.totalorder %s2005_s5, %s2005_s5 }
 0x114   :  { %1460 = vmatpush3.bf16.msra.mxu0 %v1630_v4  ;;  %1473 = vmatprep.mubr.msk.bf16.mxu1 %vm2065_vm0, %v2064_v0  ;;  %v1644_v61 = vld [vmem:[#allocation13 + $0x58] sm:$0xff]   ;;  %v1645_v62 = vld [vmem:[#allocation13 + $0x60] sm:$0xff]   ;;  %v1646_v63 = vld [vmem:[#allocation13 + $0x68] sm:$0xff]  }
 0x115   :  { %1477 = vmatprep.subr.bf16.mxu0 %v2064_v0  ;;  %v1647_v1 = vld [vmem:[#allocation13 + $0x70] sm:$0xff]   ;;  %v1648_v2 = vld [vmem:[#allocation13 + $0x78] sm:$0xff]   ;;  %v1649_v3 = vld [vmem:[#allocation14] sm:$0xff]   ;;  %p2012_p11 = por %p2011_p10, %p2010_p9 }
 0x116   :  { %v1650_v4 = vld [vmem:[#allocation14 + $0x8] sm:$0xff]   ;;  %828 = vrot.lane.b32.xlu0 %v2382_v7, %s2066_s14 }
 0x117   :  { %1462 = vmatmul.mubr.msk.bf16.vlgmr.msra.gmra.mrb[0].mxu0 %vm267_vm3, %v249_v8  ;;  %v1651_v8 = vld [vmem:[#allocation14 + $0x10] sm:$0xff]   ;;  %p2013_p12 = pnand %p2012_p11, %p2006_p8 }
 0x118   :  { %1493 = vmatprep.mubr.msk.bf16.mxu0 %vm2065_vm0, %v2064_v0  ;;  %1478 = vmatpush3.bf16.msra.mxu0 %v1633_v9  ;;  %v1652_v9 = vld [vmem:[#allocation14 + $0x18] sm:$0xff]  }
 0x119   :  { %1479 = vmatprep.subr.bf16.mxu0 %v2064_v0 }
 0x11c   :  { %1480 = vmatpush3.bf16.msra.mxu0 %v1634_v10  ;;  %v1653_v10 = vld [vmem:[#allocation14 + $0x20] sm:$0xff]  }
 0x11d   :  { %1481 = vmatprep.subr.bf16.mxu0 %v2064_v0 }
 0x120   :  { %1482 = vmatpush3.bf16.msra.mxu0 %v1635_v11 }
 0x121   :  { %1483 = vmatprep.subr.bf16.mxu0 %v2064_v0 }
 0x124   :  { %1484 = vmatpush3.bf16.msra.mxu0 %v1636_v12 }
 0x125   :  { %1485 = vmatprep.subr.bf16.mxu0 %v2064_v0 }
 0x128   :  { %1486 = vmatpush3.bf16.msra.mxu0 %v1637_v13 }
 0x129   :  { %1487 = vmatprep.subr.bf16.mxu0 %v2064_v0 }
 0x12c   :  { %1488 = vmatpush3.bf16.msra.mxu0 %v1638_v14 }
 0x12d   :  { %1489 = vmatprep.subr.bf16.mxu0 %v2064_v0 }
 0x130   :  { %1490 = vmatpush3.bf16.msra.mxu0 %v1639_v32 }
 0x131   :  { %1491 = vmatprep.subr.bf16.mxu0 %v2064_v0 }
 0x134   :  { %1492 = vmatpush3.bf16.msra.mxu0 %v1640_v33 }
 0x135   :  { %1523 = vmatprep.subr.bf16.mxu0 %v2064_v0 }
 0x1e6   :  { %v359_v15 = vpop.f32.mrb[0].mxu1 }
 0x1e7   :  { %v1469_v16 = vpop.f32.mrb[1].mxu1 }
 0x1e8   :  { %v362_v17 = vpop.f32.mrb[2].mxu1 }
 0x1e9   :  { %v1470_v20 = vpop.f32.mrb[3].mxu1 }
 0x1ea   :  { %v305_v18 = vpop.f32.mrb[0].mxu0  ;;  %v1654_v20 = vld [vmem:[#allocation14 + $0x28] sm:$0xff]  }
 0x1eb   :  { %v360_v21 = vadd.f32 %v359_v15, %v305_v18  ;;  %v1463_v22 = vpop.f32.mrb[1].mxu0 }
 0x1ec   :  { %v308_v23 = vpop.f32.mrb[2].mxu0  ;;  %v1656_v22 = vld [vmem:[#allocation14 + $0x38] sm:$0xff]  }
 0x1ed   :  { %v373_v24 = vadd.f32 %v1345_v19, %v360_v21  ;;  %v363_v25 = vadd.f32 %v362_v17, %v308_v23  ;;  %v1464_v26 = vpop.f32.mrb[3].mxu0  ;;  %v1655_v21 = vld [vmem:[#allocation14 + $0x30] sm:$0xff]  }
 0x1ef   :  { %v374_v27 = vadd.f32 %v1345_v19, %v363_v25  ;;  %v375_v28 = vmax.f32 %v373_v24, 0.0 }
 0x1f1   :  { %v376_v29 = vmax.f32 %v374_v27, 0.0  ;;  %v2410_v37 = vmul.f32 0.1, %v375_v28 }
 0x1f3   :  { %v377_v30 = vpack.c.bf16 %v376_v29, %v375_v28  ;;  %v2412_v40 = vmul.f32 0.1, %v376_v29 }
 0x1f5   :  { %1472 = vmatpush3.bf16.msra.mxu1 %v377_v30 }
 0x1f6   :  { %1497 = vmatprep.subr.bf16.mxu1 %v2064_v0 }
 0x1f8   :  { %1474 = vmatmul.mubr.msk.bf16.vlgmr.msra.gmra.mrb[4].mxu1 %vm383_vm4, %v2401_v31 }
 0x1f9   :  { %1499 = vmatprep.mubr.msk.bf16.mxu1 %vm2065_vm0, %v2064_v0 }
 0x2cb   :  { %v421_v34 = vpop.f32.mrb[4].mxu1 }
 0x2cc   :  { %v428_v35 = vmul.f32 0.9, %v421_v34  ;;  %v1475_v36 = vpop.f32.mrb[5].mxu1 }
 0x2cd   :  { %v424_v38 = vpop.f32.mrb[6].mxu1 }
 0x2ce   :  { %v429_v39 = vmul.f32 0.9, %v424_v38  ;;  %v1476_v41 = vpop.f32.mrb[7].mxu1  ;;  %v432_v42 = vadd.f32 %v2410_v37, %v428_v35  ;;  %v1658_v38 = vld [vmem:[#allocation19 + $0x8] sm:$0xff]  }
 0x2d0   :  { %v433_v43 = vadd.f32 %v2412_v40, %v429_v39  ;;  %v542_v47 = vmul.f32 0.5945349, %v432_v42  ;;  %v1365_v39 = vld [vmem:[#allocation16] ss:$0 sm:$0xff] }
 0x2d2   :  { %v434_v44 = vpack.c.bf16 %v433_v43, %v432_v42  ;;  %v543_v52 = vmul.f32 0.5945349, %v433_v43 }
 0x2d4   :  { %1494 = vmatmul.mubr.bf16.vlgmr.msra.gmra.mrb[4].mxu0 %v434_v44 }
 0x2d5   :  { %1539 = vmatprep.mubr.msk.bf16.mxu0 %vm2065_vm0, %v2064_v0  ;;  %1524 = vmatpush3.bf16.msra.mxu0 %v1649_v3 }
 0x2d6   :  { %1525 = vmatprep.subr.bf16.mxu0 %v2064_v0 }
 0x2d9   :  { %1526 = vmatpush3.bf16.msra.mxu0 %v1650_v4 }
 0x2da   :  { %1527 = vmatprep.subr.bf16.mxu0 %v2064_v0 }
 0x2dd   :  { %1528 = vmatpush3.bf16.msra.mxu0 %v1651_v8 }
 0x2de   :  { %1529 = vmatprep.subr.bf16.mxu0 %v2064_v0 }
 0x2e1   :  { %1530 = vmatpush3.bf16.msra.mxu0 %v1652_v9 }
 0x2e2   :  { %1531 = vmatprep.subr.bf16.mxu0 %v2064_v0 }
 0x2e5   :  { %1532 = vmatpush3.bf16.msra.mxu0 %v1653_v10 }
 0x2e6   :  { %1533 = vmatprep.subr.bf16.mxu0 %v2064_v0 }
 0x2e9   :  { %1534 = vmatpush3.bf16.msra.mxu0 %v1654_v20 }
 0x2ea   :  { %1535 = vmatprep.subr.bf16.mxu0 %v2064_v0 }
 0x2ed   :  { %1536 = vmatpush3.bf16.msra.mxu0 %v1655_v21 }
 0x2ee   :  { %1537 = vmatprep.subr.bf16.mxu0 %v2064_v0 }
 0x2f1   :  { %1538 = vmatpush3.bf16.msra.mxu0 %v1656_v22 }
 0x2f2   :  { %1563 = vmatprep.subr.bf16.mxu0 %v2064_v0 }
 0x3a7   :  { %v533_v45 = vpop.f32.mrb[4].mxu0 }
 0x3a8   :  { %v540_v46 = vmul.f32 0.4054651, %v533_v45  ;;  %v1495_v48 = vpop.f32.mrb[5].mxu0 }
 0x3a9   :  { %v536_v49 = vpop.f32.mrb[6].mxu0 }
 0x3aa   :  { %v544_v50 = vadd.f32 %v542_v47, %v540_v46  ;;  %v541_v51 = vmul.f32 0.4054651, %v536_v49  ;;  %v1496_v53 = vpop.f32.mrb[7].mxu0 }
 0x3ab   :  { %v835_v53 = vld [vmem:[#allocation17] sm:$0xf] }
 0x3ac   :  { %v545_v54 = vadd.f32 %v543_v52, %v541_v51  ;;  %v546_v55 = vmax.f32 %v544_v50, 0.0 }
 0x3ae   :  { %v547_v56 = vmax.f32 %v545_v54, 0.0  ;;  %v900_v54 = vsel %vm321_vm1, %v835_v53, 0 }
 0x3b0   :  { %v548_v57 = vpack.c.bf16 %v547_v56, %v546_v55  ;;  %v1659_v56 = vld [vmem:[#allocation22] sm:$0xff]  }
 0x3b2   :  { %1498 = vmatpush3.bf16.msra.mxu1 %v548_v57  ;;  %v1660_v57 = vld [vmem:[#allocation22 + $0x8] sm:$0xff]  }
 0x3b3   :  { %1503 = vmatprep.subr.bf16.mxu1 %v2064_v0 }
 0x3b5   :  { %1500 = vmatmul.mubr.msk.bf16.vlgmr.msra.gmra.mrb[8].mxu1 %vm383_vm4, %v2401_v31 }
 0x3b6   :  { %1504 = vmatpush3.bf16.msra.mxu1 %v1641_v58  ;;  %1519 = vmatprep.mubr.msk.bf16.mxu1 %vm2065_vm0, %v2064_v0 }
 0x3b7   :  { %1505 = vmatprep.subr.bf16.mxu1 %v2064_v0 }
 0x3ba   :  { %1506 = vmatpush3.bf16.msra.mxu1 %v1642_v59 }
 0x3bb   :  { %1507 = vmatprep.subr.bf16.mxu1 %v2064_v0 }
 0x3be   :  { %1508 = vmatpush3.bf16.msra.mxu1 %v1643_v60 }
 0x3bf   :  { %1509 = vmatprep.subr.bf16.mxu1 %v2064_v0 }
 0x3c2   :  { %1510 = vmatpush3.bf16.msra.mxu1 %v1644_v61 }
 0x3c3   :  { %1511 = vmatprep.subr.bf16.mxu1 %v2064_v0 }
 0x3c6   :  { %1512 = vmatpush3.bf16.msra.mxu1 %v1645_v62 }
 0x3c7   :  { %1513 = vmatprep.subr.bf16.mxu1 %v2064_v0 }
 0x3ca   :  { %1514 = vmatpush3.bf16.msra.mxu1 %v1646_v63  ;;  %v1378_v63 = vld [vmem:[#allocation20] ss:$0 sm:$0xff] }
 0x3cb   :  { %1515 = vmatprep.subr.bf16.mxu1 %v2064_v0 }
 0x3ce   :  { %1516 = vmatpush3.bf16.msra.mxu1 %v1647_v1 }
 0x3cf   :  { %1517 = vmatprep.subr.bf16.mxu1 %v2064_v0 }
 0x3d2   :  { %1518 = vmatpush3.bf16.msra.mxu1 %v1648_v2 }
 0x3d3   :  { %1543 = vmatprep.subr.bf16.mxu1 %v2064_v0 }
 0x488   :  { %v583_v11 = vpop.f32.mrb[8].mxu1 }
 0x489   :  { %v590_v12 = vmul.f32 0.9, %v583_v11  ;;  %v1501_v13 = vpop.f32.mrb[9].mxu1 }
 0x48a   :  { %v586_v14 = vpop.f32.mrb[10].mxu1  ;;  %v1661_v13 = vld [vmem:[#allocation22 + $0x10] sm:$0xff]  }
 0x48b   :  { %v591_v15 = vmul.f32 0.9, %v586_v14  ;;  %v1502_v16 = vpop.f32.mrb[11].mxu1  ;;  %v592_v17 = vadd.f32 %v590_v12, %v2410_v37  ;;  %v1657_v37 = vld [vmem:[#allocation19] sm:$0xff]   ;;  %v1662_v14 = vld [vmem:[#allocation22 + $0x18] sm:$0xff]  }
 0x48d   :  { %v593_v18 = vadd.f32 %v591_v15, %v2412_v40  ;;  %v703_v25 = vmul.f32 0.7768564, %v592_v17  ;;  %v827_v40 = vpop.permute.xlu0 %826 }
 0x48f   :  { %v594_v19 = vpack.c.bf16 %v593_v18, %v592_v17  ;;  %v704_v30 = vmul.f32 0.7768564, %v593_v18 }
 0x491   :  { %1520 = vmatmul.mubr.bf16.vlgmr.msra.gmra.mrb[12].mxu1 %v594_v19  ;;  %v829_v48 = vpop.permute.xlu0 %828 }
 0x492   :  { %1547 = vmatprep.mubr.msk.bf16.mxu1 %vm2065_vm0, %v2064_v0  ;;  %1544 = vmatpush3.bf16.msra.mxu1 %v1657_v37 }
 0x493   :  { %1545 = vmatprep.subr.bf16.mxu1 %v2064_v0 }
 0x496   :  { %1546 = vmatpush3.bf16.msra.mxu1 %v1658_v38 }
 0x497   :  { %1551 = vmatprep.subr.bf16.mxu1 %v2064_v0 }
 0x564   :  { %v694_v23 = vpop.f32.mrb[12].mxu1 }
 0x565   :  { %v701_v24 = vmul.f32 0.22314355, %v694_v23  ;;  %v1521_v26 = vpop.f32.mrb[13].mxu1 }
 0x566   :  { %v697_v27 = vpop.f32.mrb[14].mxu1 }
 0x567   :  { %v705_v28 = vadd.f32 %v703_v25, %v701_v24  ;;  %v702_v29 = vmul.f32 0.22314355, %v697_v27  ;;  %v1522_v32 = vpop.f32.mrb[15].mxu1 }
 0x569   :  { %v706_v33 = vadd.f32 %v704_v30, %v702_v29  ;;  %v707_v34 = vmax.f32 %v705_v28, 0.0 }
 0x56b   :  { %v708_v35 = vmax.f32 %v706_v33, 0.0 }
 0x56d   :  { %v709_v36 = vpack.c.bf16 %v708_v35, %v707_v34 }
 0x56f   :  { %1540 = vmatmul.mubr.bf16.vlgmr.msra.gmra.mrb[8].mxu0 %v709_v36 }
 0x570   :  { %1571 = vmatprep.mubr.msk.bf16.mxu0 %vm2065_vm0, %v2064_v0  ;;  %1564 = vmatpush3.bf16.msra.mxu0 %v1659_v56  ;;  %v1669_v56 = vld [vmem:[#allocation23 + $0x10] sm:$0xff]  }
 0x571   :  { %1565 = vmatprep.subr.bf16.mxu0 %v2064_v0 }
 0x574   :  { %1566 = vmatpush3.bf16.msra.mxu0 %v1660_v57  ;;  %v1670_v57 = vld [vmem:[#allocation23 + $0x18] sm:$0xff]  }
 0x575   :  { %1567 = vmatprep.subr.bf16.mxu0 %v2064_v0 }
 0x578   :  { %1568 = vmatpush3.bf16.msra.mxu0 %v1661_v13 }
 0x579   :  { %1569 = vmatprep.subr.bf16.mxu0 %v2064_v0 }
 0x57c   :  { %1570 = vmatpush3.bf16.msra.mxu0 %v1662_v14 }
 0x57d   :  { %1593 = vmatprep.subr.bf16.mxu0 %v2064_v0 }
 0x642   :  { %v815_v41 = vpop.f32.mrb[8].mxu0 }
 0x643   :  { %v816_v42 = vadd.f32 %v1365_v39, %v815_v41  ;;  %v1541_v43 = vpop.f32.mrb[9].mxu0  ;;  %v1664_v41 = vld [vmem:[#allocation22 + $0x28] sm:$0xff]  }
 0x644   :  { %v818_v44 = vpop.f32.mrb[10].mxu0  ;;  %v1666_v43 = vld [vmem:[#allocation22 + $0x38] sm:$0xff]  }
 0x645   :  { %v2449_v45 = vmax.f32 %v816_v42, 0.0  ;;  %v819_v46 = vadd.f32 %v1365_v39, %v818_v44  ;;  %v1542_v47 = vpop.f32.mrb[11].mxu0  ;;  %v1665_v42 = vld [vmem:[#allocation22 + $0x30] sm:$0xff]   ;;  %v1667_v44 = vld [vmem:[#allocation23] sm:$0xff]  }
 0x647   :  { %v2451_v49 = vmax.f32 %v819_v46, 0.0  ;;  %v832_v50 = vmul.f32 %v827_v40, %v2449_v45  ;;  %v1663_v40 = vld [vmem:[#allocation22 + $0x20] sm:$0xff]  }
 0x649   :  { %v833_v51 = vmul.f32 %v829_v48, %v2451_v49 }
 0x64b   :  { %v834_v52 = vpack.c.bf16 %v833_v51, %v832_v50 }
 0x64d   :  { %841 = vrot.lane.b32.xlu1 %v834_v52, %s2067_s16 }
 0x6bf   :  { %v842_v55 = vpop.permute.xlu1 %841 }
 0x6c0   :  { %1548 = vmatmul.mubr.msk.bf16.vlgmr.msra.gmra.mrb[16].mxu1 %vm267_vm3, %v842_v55  ;;  %v1668_v55 = vld [vmem:[#allocation23 + $0x8] sm:$0xff]  }
 0x6c1   :  { %1552 = vmatpush3.bf16.msra.mxu1 %v900_v54  ;;  %1553 = vmatprep.mubr.msk.bf16.mxu1 %vm2065_vm0, %v2064_v0 }
 0x6c2   :  { %1557 = vmatprep.subr.bf16.mxu1 %v2064_v0 }
 0x6c8   :  { %1554 = vmatmul.mubr.msk.bf16.vlgmr.msra.gmra.mrb[20].mxu1 %vm317_vm2, %v2377_v5 }
 0x6c9   :  { %1559 = vmatprep.mubr.msk.bf16.mxu1 %vm2065_vm0, %v2064_v0 }
 0x793   :  { %v892_v58 = vpop.f32.mrb[16].mxu1 }
 0x794   :  { %v1549_v59 = vpop.f32.mrb[17].mxu1 }
 0x795   :  { %v895_v60 = vpop.f32.mrb[18].mxu1 }
 0x796   :  { %v1550_v61 = vpop.f32.mrb[19].mxu1 }
 0x79b   :  { %v936_v62 = vpop.f32.mrb[20].mxu1 }
 0x79c   :  { %v937_v1 = vadd.f32 %v936_v62, %v892_v58  ;;  %v1555_v2 = vpop.f32.mrb[21].mxu1 }
 0x79d   :  { %v939_v5 = vpop.f32.mrb[22].mxu1 }
 0x79e   :  { %v950_v3 = vadd.f32 %v1378_v63, %v937_v1  ;;  %v940_v4 = vadd.f32 %v939_v5, %v895_v60  ;;  %v1556_v8 = vpop.f32.mrb[23].mxu1 }
 0x7a0   :  { %v951_v9 = vadd.f32 %v1378_v63, %v940_v4  ;;  %v952_v10 = vmax.f32 %v950_v3, 0.0 }
 0x7a2   :  { %v953_v11 = vmax.f32 %v951_v9, 0.0  ;;  %v998_v18 = vmul.f32 0.1, %v952_v10 }
 0x7a4   :  { %v954_v12 = vpack.c.bf16 %v953_v11, %v952_v10  ;;  %v999_v21 = vmul.f32 0.1, %v953_v11  ;;  %v1391_v10 = vld [vmem:[#allocation25] ss:$0 sm:$0xff] }
 0x7a6   :  { %1558 = vmatpush3.bf16.msra.mxu1 %v954_v12 }
 0x7a7   :  { %1575 = vmatprep.subr.bf16.mxu1 %v2064_v0 }
 0x7a9   :  { %1560 = vmatmul.mubr.msk.bf16.vlgmr.msra.gmra.mrb[24].mxu1 %vm383_vm4, %v2401_v31 }
 0x7aa   :  { %1577 = vmatprep.mubr.msk.bf16.mxu1 %vm2065_vm0, %v2064_v0 }
 0x87c   :  { %v989_v15 = vpop.f32.mrb[24].mxu1 }
 0x87d   :  { %v996_v16 = vmul.f32 0.9, %v989_v15  ;;  %v1561_v17 = vpop.f32.mrb[25].mxu1 }
 0x87e   :  { %v992_v19 = vpop.f32.mrb[26].mxu1 }
 0x87f   :  { %v997_v20 = vmul.f32 0.9, %v992_v19  ;;  %v1562_v22 = vpop.f32.mrb[27].mxu1  ;;  %v1000_v23 = vadd.f32 %v998_v18, %v996_v16  ;;  %v1308_v16 = vsub.f32 1.0, %v2449_v45  ;;  %v1309_v19 = vsub.f32 1.0, %v2451_v49 }
 0x880   :  { %v1307_v22 = vmul.f32 %v2451_v49, %v2382_v7 }
 0x881   :  { %v1001_v24 = vadd.f32 %v999_v21, %v997_v20  ;;  %v1082_v28 = vmul.f32 0.5945349, %v1000_v23 }
 0x883   :  { %v1002_v25 = vpack.c.bf16 %v1001_v24, %v1000_v23  ;;  %v1083_v34 = vmul.f32 0.5945349, %v1001_v24 }
 0x885   :  { %1572 = vmatmul.mubr.msk.bf16.vlgmr.msra.gmra.mrb[12].mxu0 %vm1035_vm5, %v1002_v25 }
 0x886   :  { %1601 = vmatprep.mubr.msk.bf16.mxu0 %vm2065_vm0, %v2064_v0  ;;  %1594 = vmatpush3.bf16.msra.mxu0 %v1667_v44 }
 0x887   :  { %1595 = vmatprep.subr.bf16.mxu0 %v2064_v0 }
 0x88a   :  { %1596 = vmatpush3.bf16.msra.mxu0 %v1668_v55 }
 0x88b   :  { %1597 = vmatprep.subr.bf16.mxu0 %v2064_v0 }
 0x88e   :  { %1598 = vmatpush3.bf16.msra.mxu0 %v1669_v56 }
 0x88f   :  { %1599 = vmatprep.subr.bf16.mxu0 %v2064_v0 }
 0x892   :  { %1600 = vmatpush3.bf16.msra.mxu0 %v1670_v57 }
 0x958   :  { %v1073_v26 = vpop.f32.mrb[12].mxu0 }
 0x959   :  { %v1080_v27 = vmul.f32 0.4054651, %v1073_v26  ;;  %v1573_v29 = vpop.f32.mrb[13].mxu0 }
 0x95a   :  { %v1076_v30 = vpop.f32.mrb[14].mxu0 }
 0x95b   :  { %v1084_v32 = vadd.f32 %v1082_v28, %v1080_v27  ;;  %v1081_v33 = vmul.f32 0.4054651, %v1076_v30  ;;  %v1574_v35 = vpop.f32.mrb[15].mxu0 }
 0x95d   :  { %v1085_v36 = vadd.f32 %v1083_v34, %v1081_v33  ;;  %v1086_v37 = vmax.f32 %v1084_v32, 0.0 }
 0x95f   :  { %v1087_v38 = vmax.f32 %v1085_v36, 0.0 }
 0x961   :  { %v1088_v39 = vpack.c.bf16 %v1087_v38, %v1086_v37 }
 0x963   :  { %1576 = vmatpush3.bf16.msra.mxu1 %v1088_v39 }
 0x964   :  { %1581 = vmatprep.subr.bf16.mxu1 %v2064_v0 }
 0x966   :  { %1578 = vmatmul.mubr.msk.bf16.vlgmr.msra.gmra.mrb[28].mxu1 %vm383_vm4, %v2401_v31 }
 0x967   :  { %1582 = vmatpush3.bf16.msra.mxu1 %v1663_v40  ;;  %1589 = vmatprep.mubr.msk.bf16.mxu1 %vm2065_vm0, %v2064_v0 }
 0x968   :  { %1583 = vmatprep.subr.bf16.mxu1 %v2064_v0 }
 0x96b   :  { %1584 = vmatpush3.bf16.msra.mxu1 %v1664_v41 }
 0x96c   :  { %1585 = vmatprep.subr.bf16.mxu1 %v2064_v0 }
 0x96f   :  { %1586 = vmatpush3.bf16.msra.mxu1 %v1665_v42 }
 0x970   :  { %1587 = vmatprep.subr.bf16.mxu1 %v2064_v0 }
 0x973   :  { %1588 = vmatpush3.bf16.msra.mxu1 %v1666_v43 }
 0xa39   :  { %v1123_v31 = vpop.f32.mrb[28].mxu1 }
 0xa3a   :  { %v1130_v46 = vmul.f32 0.9, %v1123_v31  ;;  %v1579_v47 = vpop.f32.mrb[29].mxu1 }
 0xa3b   :  { %v1126_v48 = vpop.f32.mrb[30].mxu1 }
 0xa3c   :  { %v1131_v50 = vmul.f32 0.9, %v1126_v48  ;;  %v1580_v51 = vpop.f32.mrb[31].mxu1  ;;  %v1132_v52 = vadd.f32 %v1130_v46, %v998_v18  ;;  %v1306_v18 = vmul.f32 %v2449_v45, %v2380_v6 }
 0xa3e   :  { %v1133_v53 = vadd.f32 %v1131_v50, %v999_v21  ;;  %v1214_v60 = vmul.f32 0.7768564, %v1132_v52 }
 0xa40   :  { %v1134_v54 = vpack.c.bf16 %v1133_v53, %v1132_v52  ;;  %v1215_v2 = vmul.f32 0.7768564, %v1133_v53 }
 0xa42   :  { %1590 = vmatmul.mubr.msk.bf16.vlgmr.msra.gmra.mrb[32].mxu1 %vm1035_vm5, %v1134_v54 }
 0xb15   :  { %v1205_v58 = vpop.f32.mrb[32].mxu1 }
 0xb16   :  { %v1212_v59 = vmul.f32 0.22314355, %v1205_v58  ;;  %v1591_v61 = vpop.f32.mrb[33].mxu1 }
 0xb17   :  { %v1208_v62 = vpop.f32.mrb[34].mxu1 }
 0xb18   :  { %v1216_v63 = vadd.f32 %v1214_v60, %v1212_v59  ;;  %v1213_v1 = vmul.f32 0.22314355, %v1208_v62  ;;  %v1592_v5 = vpop.f32.mrb[35].mxu1 }
 0xb1a   :  { %v1217_v3 = vadd.f32 %v1215_v2, %v1213_v1  ;;  %v1218_v4 = vmax.f32 %v1216_v63, 0.0 }
 0xb1c   :  { %v1219_v8 = vmax.f32 %v1217_v3, 0.0 }
 0xb1e   :  { %v1220_v9 = vpack.c.bf16 %v1219_v8, %v1218_v4 }
 0xb20   :  { %1602 = vmatmul.mubr.msk.bf16.vlgmr.msra.gmra.mrb[16].mxu0 %vm1035_vm5, %v1220_v9 }
 0xbf3   :  { %v1297_v11 = vpop.f32.mrb[16].mxu0 }
 0xbf4   :  { %v1298_v0 = vadd.f32 %v1391_v10, %v1297_v11  ;;  %v1603_v12 = vpop.f32.mrb[17].mxu0 }
 0xbf5   :  { %v1300_v13 = vpop.f32.mrb[18].mxu0 }
 0xbf6   :  { %1671 = vtanh.f32 %v1298_v0  ;;  %v1301_v14 = vadd.f32 %v1391_v10, %v1300_v13  ;;  %v1604_v15 = vpop.f32.mrb[19].mxu0 }
 0xbf8   :  { %1673 = vtanh.f32 %v1301_v14 }
 0xc00   :  { %v1672_v17 = vpop.eup %1671 }
 0xc01   :  { %v1310_v20 = vmul.f32 %v1672_v17, %v1308_v16 }
 0xc02   :  { %v1674_v21 = vpop.eup %1673 }
 0xc03   :  { %v1311_v23 = vmul.f32 %v1674_v21, %v1309_v19  ;;  %v1312_v24 = vadd.f32 %v1310_v20, %v1306_v18 }
 0xc05   :  { %v1313_v25 = vadd.f32 %v1311_v23, %v1307_v22  ;;  %1314 = vst.msk [vmem:[#allocation26] sm:$0xff] %vm267_vm3, %v1312_v24 }
 0xc07   :  { %1315 = vst.msk [vmem:[#allocation26 + $0x8] sm:$0xff] %vm267_vm3, %v1313_v25 }
 0xc08   :  { %2016 = shalt.err (!%p2013_p12)
}
 0xc09   :  { %s2017_s2 = scalar_lea.hbm %s2527_s15, 256 }
 0xc0a   :  { %p2018_p13 = scmp.ne.s32.totalorder %s2527_s15, %s2017_s2  ;;  %p2021_p0 = scmp.lt.u32.totalorder %s2017_s2, %s2527_s15 }
 0xc0c   :  { %p2023_p1 = pnand %p2021_p0, %p2018_p13 }
 0xc0e   :  { %2026 = shalt.err (!%p2023_p1)
}
 0xc0f   :  { %1327 = dma.vmem_to_hbm [thread:$0]  %s1322_s24, 256, %s2527_s15, [#allocation4], %s2056_s0, %s2056_s0, %s2057_s7  }
 0xc10   :  { %2043 = dma.done.wait [#allocation4], 256  }
 0xc11   :  { %2044 = vsyncadd [#allocation4], 4294967040 }
 0xc12   :  { %1331 = vsyncpa [#allocation3], 1 }
 0xc13   :  { %1332 = vsyncpa [#allocation6], 1 }
 0xc14   :  { %1333 = vsyncpa [#allocation9], 1 }
 0xc15   :  { %1334 = vsyncpa [#allocation12], 1 }
 0xc16   :  { %1335 = vsyncpa [#allocation15], 1 }
 0xc17   :  { %1336 = vsyncpa [#allocation18], 1 }
 0xc18   :  { %1337 = vsyncpa [#allocation21], 1 }
 0xc19   :  { %1338 = vsyncpa [#allocation24], 1 }
 0xc1a   :  { %1339 = vsyncpa [#allocation4], 1 }

</bundles_post_ra>
